<compile_context>
chip_gen: v5e
topology: v5e:2x2
jax: 0.10.0
libtpu: 0.0.40
codegen_flags: <defaults>
</compile_context>

<pallas_src>
import jax
import jax.numpy as jnp
from jax import lax
from jax.experimental import pallas as pl
from jax.experimental.pallas import tpu as pltpu

EPS = 1e-5
LANE = 128
SUBLANE = 8
VMEM_LIMIT = 48 * 1024 * 1024    # <= ~48 MiB: safe on v7x (64 MiB/TC), roomy on v5e/v6e
TILE_BUDGET = 32 * 1024 * 1024   # working-set budget used to size tile_m


def _round_up(x, m):
    return (x + m - 1) // m * m


# -----------------------------------------------------------------------------
# Pass 1: im2col matmul on the MXU (bf16 in, f32 acc).  Emits
#   * the f32 conv tile (consumed by pass 2 -> no conv recompute), and
#   * per-channel partial sums / sums-of-squares, accumulated into a resident
#     (16, Cout) block: rows 0:8 = sum (by sublane), rows 8:16 = sum of squares.
# The grid is (n_par, n_inner): the outer axis is "parallel" (one partial-stats
# slot per slice -> megacore on v7x), the inner reduction axis is "arbitrary".
# -----------------------------------------------------------------------------
def _conv_stats_kernel(patches_ref, w_ref, conv_ref, stats_ref):
    @pl.when(pl.program_id(1) == 0)
    def _():
        stats_ref[...] = jnp.zeros_like(stats_ref)

    conv = jnp.dot(patches_ref[...], w_ref[...],
                   preferred_element_type=jnp.float32)            # (tm, Cout) f32
    conv_ref[...] = conv

    tm, c = conv.shape
    g = conv.reshape(tm // SUBLANE, SUBLANE, c)                   # layout-preserving
    # Plain vreg adds into 8 sublane rows; no per-tile cross-sublane reduce.
    stats_ref[0:SUBLANE, :] = stats_ref[0:SUBLANE, :] + jnp.sum(g, axis=0)
    stats_ref[SUBLANE:2 * SUBLANE, :] = (
        stats_ref[SUBLANE:2 * SUBLANE, :] + jnp.sum(g * g, axis=0))


# -----------------------------------------------------------------------------
# Pass 2: pure elementwise (VPU) normalize + ReLU on the stored conv tiles.
# -----------------------------------------------------------------------------
def _apply_kernel(conv_ref, ss_ref, out_ref):
    y = conv_ref[...] * ss_ref[0:1, :] + ss_ref[1:2, :]
    out_ref[...] = jnp.maximum(y, 0.0).astype(out_ref.dtype)


def _choose_tile_m(m, k, cout, budget=TILE_BUDGET):
    # VMEM usage is lane-padded regardless of the HBM shapes.
    lane_k = _round_up(k, LANE)
    lane_c = _round_up(cout, LANE)
    p1 = 2 * (lane_k * 2 + lane_c * 4)        # pass 1: bf16 patches in + f32 conv out (x2 buf)
    p2 = 2 * (lane_c * 4 + lane_c * 4)        # pass 2: f32 conv in + f32 out (x2 buf)
    per_row = max(p1, p2)
    resident = (2 * _round_up(k, SUBLANE) * lane_c * 2   # bf16 weights
                + 2 * 2 * SUBLANE * lane_c * 4           # stats block
                + 2 * 2 * lane_c * 4)                    # scale/shift
    avail = max(budget - resident, 1 << 20)
    tm = int(avail // per_row)
    tm = max(LANE, min(4096, (tm // LANE) * LANE))
    return min(tm, _round_up(m, LANE))


def _im2col_bf16(x, k, stride, pad):
    """(N,C,H,W) -> bf16 patch matrix (N*Ho*Wo, C*k*k); K row-order (c, kh, kw)."""
    N, C, H, W = x.shape
    Ho = (H + 2 * pad - k) // stride + 1
    Wo = (W + 2 * pad - k) // stride + 1
    xp = jnp.pad(x.astype(jnp.bfloat16),
                 ((0, 0), (0, 0), (pad, pad), (pad, pad)))
    cols = []
    for i in range(k):
        for j in range(k):
            cols.append(xp[:, :, i:i + stride * Ho:stride,
                              j:j + stride * Wo:stride])          # (N, C, Ho, Wo)
    patches = jnp.stack(cols, axis=2)                             # (N, C, k*k, Ho, Wo)
    patches = patches.transpose(0, 3, 4, 1, 2).reshape(N * Ho * Wo, C * k * k)
    return patches, Ho, Wo


def cbr_forward(x, weight, bias, gamma, beta, *,
                kernel_size=3, stride=2, padding=1):
    """x: (N, Cin, H, W); weight: (Cout, Cin, k, k); bias/gamma/beta: (Cout,)."""
    del bias  # exactly cancelled by train-mode BatchNorm's batch-mean subtraction
    N, Cin, H, W = x.shape
    Cout = weight.shape[0]
    K = Cin * kernel_size * kernel_size

    # TODO(synk): build the im2col patches per M-tile inside pass 1 (9 shifted
    # (tm, Cin) x (Cin, Cout) matmuls on an NHWC block) so the patch matrix is
    # never materialized in HBM.
    patches, Ho, Wo = _im2col_bf16(x, kernel_size, stride, padding)
    M = N * Ho * Wo

    tile_m = _choose_tile_m(M, K, Cout)
    n_tiles = -(-M // tile_m)
    n_par = 2 if n_tiles >= 2 else 1        # megacore split for pass 1 (v7x)
    n_tiles = _round_up(n_tiles, n_par)
    n_inner = n_tiles // n_par
    M_pad = n_tiles * tile_m
    if M_pad > M:
        # Zero rows contribute nothing to sum / sum-of-squares; the stats are
        # divided by the true M, so padding does not perturb the batch stats.
        patches = jnp.pad(patches, ((0, M_pad - M), (0, 0)))

    w2d = weight.reshape(Cout, K).T.astype(jnp.bfloat16)          # (K, Cout), unpadded

    # Pass 1: conv + per-slot partial statistics.
    conv2d, stats = pl.pallas_call(
        _conv_stats_kernel,
        out_shape=(jax.ShapeDtypeStruct((M_pad, Cout), jnp.float32),
                   jax.ShapeDtypeStruct((n_par * 2 * SUBLANE, Cout), jnp.float32)),
        grid=(n_par, n_inner),
        in_specs=[
            pl.BlockSpec((tile_m, K), lambda p, t: (p * n_inner + t, 0)),
            pl.BlockSpec((K, Cout), lambda p, t: (0, 0)),
        ],
        out_specs=(
            pl.BlockSpec((tile_m, Cout), lambda p, t: (p * n_inner + t, 0)),
            pl.BlockSpec((2 * SUBLANE, Cout), lambda p, t: (p, 0)),
        ),
        compiler_params=pltpu.CompilerParams(
            dimension_semantics=("parallel", "arbitrary"),
            vmem_limit_bytes=VMEM_LIMIT),
    )(patches, w2d)

    # Tiny XLA finalize: collapse sublane/slot partials, fuse into (scale, shift).
    # NOTE: single-pass var = E[x^2] - mean^2 can cancel when |mean| >> std;
    # fine for conv activations at these scales (see review correctness notes).
    sums = stats.reshape(n_par, 2, SUBLANE, Cout).sum(axis=(0, 2))   # (2, Cout)
    mean = sums[0] / M
    var = jnp.maximum(sums[1] / M - mean * mean, 0.0)
    scale = gamma.astype(jnp.float32) * lax.rsqrt(var + EPS)
    shift = beta.astype(jnp.float32) - mean * scale
    scale_shift = jnp.stack([scale, shift], axis=0)                  # (2, Cout)

    # Pass 2: elementwise normalize + ReLU on the stored conv (mem-bound, no
    # channel padding so only the real Cout columns hit HBM).
    out2d = pl.pallas_call(
        _apply_kernel,
        out_shape=jax.ShapeDtypeStruct((M_pad, Cout), jnp.float32),
        grid=(n_tiles,),
        in_specs=[
            pl.BlockSpec((tile_m, Cout), lambda i: (i, 0)),
            pl.BlockSpec((2, Cout), lambda i: (0, 0)),
        ],
        out_specs=pl.BlockSpec((tile_m, Cout), lambda i: (i, 0)),
        compiler_params=pltpu.CompilerParams(
            dimension_semantics=("parallel",),
            vmem_limit_bytes=VMEM_LIMIT),
    )(conv2d, scale_shift)

    # (M, Cout) NHWC-flat -> NCHW (module semantics).
    # TODO(synk): fuse the NHWC->NCHW conversion into pass 2 (per-tile XLU
    # transpose into an (N, Cout, Ho*Wo)-layout output) to save this XLA pass.
    return out2d[:M].reshape(N, Ho, Wo, Cout).transpose(0, 3, 1, 2)


def _reference(x, weight, bias, gamma, beta, stride=2, padding=1):
    # Same bf16 input/weight quantization as the kernel's MXU path, f32 math.
    xq = x.astype(jnp.bfloat16).astype(jnp.float32)
    wq = weight.astype(jnp.bfloat16).astype(jnp.float32)
    y = lax.conv_general_dilated(
        xq, wq, window_strides=(stride, stride),
        padding=[(padding, padding), (padding, padding)],
        dimension_numbers=("NCHW", "OIHW", "NCHW"),
        precision=lax.Precision.HIGHEST)
    y = y + bias.reshape(1, -1, 1, 1)
    mean = jnp.mean(y, axis=(0, 2, 3), keepdims=True)
    var = jnp.var(y, axis=(0, 2, 3), keepdims=True)
    y = (y - mean) * lax.rsqrt(var + EPS)
    y = y * gamma.reshape(1, -1, 1, 1) + beta.reshape(1, -1, 1, 1)
    return jnp.maximum(y, 0.0)


if __name__ == "__main__":
    key = jax.random.PRNGKey(0)
    k_x, k_w, k_b = jax.random.split(key, 3)

    N, Cin, H, W = 2, 4, 16, 16
    Cout, ks, stride, pad = 8, 3, 2, 1

    x = jax.random.normal(k_x, (N, Cin, H, W), dtype=jnp.float32)
    weight = 0.1 * jax.random.normal(k_w, (Cout, Cin, ks, ks), dtype=jnp.float32)
    bias = 0.05 * jax.random.normal(k_b, (Cout,), dtype=jnp.float32)
    gamma = jnp.ones((Cout,), dtype=jnp.float32)   # BatchNorm2d default weight
    beta = jnp.zeros((Cout,), dtype=jnp.float32)   # BatchNorm2d default bias

    out = cbr_forward(x, weight, bias, gamma, beta,
                      kernel_size=ks, stride=stride, padding=pad)
    out = jax.block_until_ready(out)

    ref = _reference(x, weight, bias, gamma, beta, stride=stride, padding=pad)
    assert out.shape == (N, Cout, H // 2, W // 2), out.shape
    err = float(jnp.max(jnp.abs(out - ref)))
    assert jnp.allclose(out, ref, atol=1e-3, rtol=1e-3), err

    print("KERNEL_OK")
</pallas_src>

<mosaic_0001>
module attributes {stable_mosaic.version = 11 : i64} {
  func.func @_conv_stats_kernel(%arg0: i32, %arg1: i32, %arg2: memref<128x36xbf16, #tpu.memory_space<vmem>>, %arg3: memref<36x8xbf16, #tpu.memory_space<vmem>>, %arg4: memref<128x8xf32, #tpu.memory_space<vmem>>, %arg5: memref<16x8xf32, #tpu.memory_space<vmem>>) attributes {dimension_semantics = [#tpu.dimension_semantics<parallel>, #tpu.dimension_semantics<arbitrary>], iteration_bounds = array<i64: 1, 1>, scalar_prefetch = 0 : i64, scratch_operands = 0 : i64, tpu.core_type = #tpu.core_type<tc>, window_params = [{transform_indices = @transform_0, window_bounds = array<i64: 128, 36>}, {pipeline_mode = #tpu.pipeline_mode<synchronous>, transform_indices = @transform_1, window_bounds = array<i64: 36, 8>}, {transform_indices = @transform_2, window_bounds = array<i64: 128, 8>}, {transform_indices = @transform_3, window_bounds = array<i64: 16, 8>}]} {
    %c0_i32 = arith.constant 0 : i32
    %0 = arith.cmpi eq, %arg1, %c0_i32 : i32
    %1 = arith.extui %0 : i1 to i32
    %c0_i32_0 = arith.constant 0 : i32
    %2 = arith.cmpi ne, %1, %c0_i32_0 : i32
    scf.if %2 {
      %cst_15 = arith.constant 0.000000e+00 : f32
      %17 = vector.broadcast %cst_15 : f32 to vector<16x8xf32>
      %c0_16 = arith.constant 0 : index
      %c0_17 = arith.constant 0 : index
      %18 = vector.load %arg5[%c0_16, %c0_17] : memref<16x8xf32, #tpu.memory_space<vmem>>, vector<16x8xf32>
      tpu.vector_store %arg5[%c0_16, %c0_17], %17 {strides = array<i32>} : memref<16x8xf32, #tpu.memory_space<vmem>>, vector<16x8xf32>,
    } else {
    }
    %c0 = arith.constant 0 : index
    %c0_1 = arith.constant 0 : index
    %3 = vector.load %arg2[%c0, %c0_1] : memref<128x36xbf16, #tpu.memory_space<vmem>>, vector<128x36xbf16>
    %c0_2 = arith.constant 0 : index
    %c0_3 = arith.constant 0 : index
    %4 = vector.load %arg3[%c0_2, %c0_3] : memref<36x8xbf16, #tpu.memory_space<vmem>>, vector<36x8xbf16>
    %cst = arith.constant dense<0.000000e+00> : vector<128x8xf32>
    %5 = tpu.matmul %3, %4, %cst {dimension_numbers = #tpu.dot_dimension_numbers<[1], [0], [0], [1], [0, 0, 1, 1], [], []>} : vector<128x36xbf16>, vector<36x8xbf16>, vector<128x8xf32> -> vector<128x8xf32>
    %c0_4 = arith.constant 0 : index
    %c0_5 = arith.constant 0 : index
    %6 = vector.load %arg4[%c0_4, %c0_5] : memref<128x8xf32, #tpu.memory_space<vmem>>, vector<128x8xf32>
    tpu.vector_store %arg4[%c0_4, %c0_5], %5 {strides = array<i32>} : memref<128x8xf32, #tpu.memory_space<vmem>>, vector<128x8xf32>,
    %7 = vector.shape_cast %5 : vector<128x8xf32> to vector<16x8x8xf32>
    %c0_6 = arith.constant 0 : index
    %c0_7 = arith.constant 0 : index
    %8 = vector.load %arg5[%c0_6, %c0_7] : memref<16x8xf32, #tpu.memory_space<vmem>>, vector<8x8xf32>
    %cst_8 = arith.constant dense<0.000000e+00> : vector<8x8xf32>
    %9 = vector.multi_reduction <add>, %7, %cst_8 [0] : vector<16x8x8xf32> to vector<8x8xf32>
    %10 = arith.addf %8, %9 : vector<8x8xf32>
    %c0_9 = arith.constant 0 : index
    %c0_10 = arith.constant 0 : index
    %11 = vector.load %arg5[%c0_9, %c0_10] : memref<16x8xf32, #tpu.memory_space<vmem>>, vector<8x8xf32>
    tpu.vector_store %arg5[%c0_9, %c0_10], %10 {strides = array<i32>} : memref<16x8xf32, #tpu.memory_space<vmem>>, vector<8x8xf32>,
    %c8 = arith.constant 8 : index
    %c0_11 = arith.constant 0 : index
    %12 = vector.load %arg5[%c8, %c0_11] : memref<16x8xf32, #tpu.memory_space<vmem>>, vector<8x8xf32>
    %13 = arith.mulf %7, %7 : vector<16x8x8xf32>
    %cst_12 = arith.constant dense<0.000000e+00> : vector<8x8xf32>
    %14 = vector.multi_reduction <add>, %13, %cst_12 [0] : vector<16x8x8xf32> to vector<8x8xf32>
    %15 = arith.addf %12, %14 : vector<8x8xf32>
    %c8_13 = arith.constant 8 : index
    %c0_14 = arith.constant 0 : index
    %16 = vector.load %arg5[%c8_13, %c0_14] : memref<16x8xf32, #tpu.memory_space<vmem>>, vector<8x8xf32>
    tpu.vector_store %arg5[%c8_13, %c0_14], %15 {strides = array<i32>} : memref<16x8xf32, #tpu.memory_space<vmem>>, vector<8x8xf32>,
    return
  }
  func.func @transform_0(%arg0: i32, %arg1: i32) -> (i32, i32) {
    %c1_i32 = arith.constant 1 : i32
    %0 = arith.muli %arg0, %c1_i32 : i32
    %1 = arith.addi %0, %arg1 : i32
    %c0_i32 = arith.constant 0 : i32
    %c0_i32_0 = arith.constant 0 : i32
    return %1, %c0_i32 : i32, i32
  }
  func.func @transform_1(%arg0: i32, %arg1: i32) -> (i32, i32) {
    %c0_i32 = arith.constant 0 : i32
    %c0_i32_0 = arith.constant 0 : i32
    %c0_i32_1 = arith.constant 0 : i32
    return %c0_i32, %c0_i32_0 : i32, i32
  }
  func.func @transform_2(%arg0: i32, %arg1: i32) -> (i32, i32) {
    %c1_i32 = arith.constant 1 : i32
    %0 = arith.muli %arg0, %c1_i32 : i32
    %1 = arith.addi %0, %arg1 : i32
    %c0_i32 = arith.constant 0 : i32
    %c0_i32_0 = arith.constant 0 : i32
    return %1, %c0_i32 : i32, i32
  }
  func.func @transform_3(%arg0: i32, %arg1: i32) -> (i32, i32) {
    %c0_i32 = arith.constant 0 : i32
    %c0_i32_0 = arith.constant 0 : i32
    return %arg0, %c0_i32 : i32, i32
  }
}

</mosaic_0001>

<bundles_post_ra>
// kernel: tpu_custom_call.1
= control target key start
LH: loop header
LB: loop body
LE: loop exit
PB: predicated region body
PF: predicated region fallthrough
CT: control target
= control target key end

     0   :  { %vm158_vm0 = vcmask 1041408   ;;  %vm133_vm1 = vcmask 293888   ;;  %vm54_vm2 = vcmask 64512   ;;  %v416_v20 = vmov 0.0   ;;  %s626_s1 = inlined_call_operand.vmem [shape: bf16[36,8], index: 1, kind: input, shape index: {}]   ;;  %s627_s0 = inlined_call_operand.vmem [shape: bf16[128,36], index: 0, kind: input, shape index: {}]   ;;  %s628_s2 = inlined_call_operand.vmem [shape: f32[128,8], index: 2, kind: output, shape index: {0}]   ;;  %s629_s3 = inlined_call_operand.vmem [shape: f32[16,8], index: 3, kind: output, shape index: {1}]  }
   0x1   :  { %v77_v0 = vld [vmem:[%s626_s1 + $0x10] sm:$0x3]  ;;  %v405_v4 = vld [vmem:[%s626_s1 + $0x8] sm:$0xff]  ;;  %v404_v5 = vld [vmem:[%s626_s1] sm:$0xff]  ;;  %55 = vst.msk [vmem:[%s629_s3] sm:$0xff] %vm54_vm2, %v416_v20 }
   0x2   :  { %v127_v1 = vunpack.c.l.b16 %v77_v0  ;;  %v396_v6 = vld [vmem:[%s627_s0] sm:$0xff]  ;;  %v398_v7 = vld [vmem:[%s627_s0 + $0x10] sm:$0xff]  ;;  %v397_v10 = vld [vmem:[%s627_s0 + $0x8] sm:$0xff]  ;;  %56 = vst.msk [vmem:[%s629_s3 + $0x8] sm:$0xff] %vm54_vm2, %v416_v20 }
   0x3   :  { %v400_v8 = vld [vmem:[%s627_s0 + $0x20] sm:$0xff]  ;;  %v402_v9 = vld [vmem:[%s627_s0 + $0x30] sm:$0xff]  ;;  %v399_v11 = vld [vmem:[%s627_s0 + $0x18] sm:$0xff] }
   0x4   :  { %v130_v2 = vpack.c.b16 %v127_v1, %v127_v1  ;;  %v401_v12 = vld [vmem:[%s627_s0 + $0x28] sm:$0xff]  ;;  %v403_v13 = vld [vmem:[%s627_s0 + $0x38] sm:$0xff] }
   0x6   :  { %v160_v3 = vsel %vm158_vm0, %v130_v2, 0 }
   0x7   :  { %167 = vmatpush.bf16.msra.mxu0 %v160_v3  ;;  %406 = vmatpush.bf16.msra.mxu1 %v160_v3 }
   0x8   :  { %407 = vmatpush.bf16.msra.mxu2 %v160_v3  ;;  %408 = vmatpush.bf16.msra.mxu3 %v160_v3 }
   0xb   :  { %168 = vmatpush.bf16.msra.mxu0 %v405_v4  ;;  %409 = vmatpush.bf16.msra.mxu1 %v405_v4 }
   0xc   :  { %410 = vmatpush.bf16.msra.mxu2 %v405_v4  ;;  %411 = vmatpush.bf16.msra.mxu3 %v405_v4 }
   0xf   :  { %169 = vmatpush.bf16.msra.mxu0 %v404_v5  ;;  %412 = vmatpush.bf16.msra.mxu1 %v404_v5 }
  0x10   :  { %413 = vmatpush.bf16.msra.mxu2 %v404_v5  ;;  %414 = vmatpush.bf16.msra.mxu3 %v404_v5 }
  0x12   :  { %388 = vmatmul.msk.bf16.vlgmr.msra.gmra.mxu0 %vm133_vm1, %v396_v6  ;;  %390 = vmatmul.msk.bf16.vlgmr.msra.gmra.mxu1 %vm133_vm1, %v398_v7 }
  0x13   :  { %392 = vmatmul.msk.bf16.vlgmr.msra.gmra.mxu2 %vm133_vm1, %v400_v8  ;;  %394 = vmatmul.msk.bf16.vlgmr.msra.gmra.mxu3 %vm133_vm1, %v402_v9 }
  0x22   :  { %389 = vmatmul.msk.bf16.gmra.mxu0 %vm133_vm1, %v397_v10  ;;  %391 = vmatmul.msk.bf16.gmra.mxu1 %vm133_vm1, %v399_v11 }
  0x23   :  { %393 = vmatmul.msk.bf16.gmra.mxu2 %vm133_vm1, %v401_v12  ;;  %395 = vmatmul.msk.bf16.gmra.mxu3 %vm133_vm1, %v403_v13 }
  0x8f   :  { %v171_v14 = vpop.f32.mrf.mxu0  ;;  %v181_v15 = vpop.f32.mrf.mxu1 }
  0x90   :  { %212 = vst.msk [vmem:[%s628_s2] sm:$0xff] %vm54_vm2, %v171_v14  ;;  %v263_v26 = vmul.f32 %v171_v14, %v171_v14  ;;  %v229_v29 = vsel %vm54_vm2, %v171_v14, 0.0  ;;  %v267_v41 = vmul.f32 %v181_v15, %v181_v15  ;;  %v236_v46 = vsel %vm54_vm2, %v181_v15, 0.0 }
  0x91   :  { %216 = vst.msk [vmem:[%s628_s2 + $0x20] sm:$0xff] %vm54_vm2, %v181_v15 }
  0x92   :  { %v279_v33 = vsel %vm54_vm2, %v263_v26, 0.0  ;;  %v286_v51 = vsel %vm54_vm2, %v267_v41, 0.0 }
  0x96   :  { %v486_v16 = vpop.f32.mrf.mxu2  ;;  %v488_v17 = vpop.f32.mrf.mxu3 }
  0x97   :  { %v173_v18 = vpop.f32.mrf.mxu0  ;;  %v183_v19 = vpop.f32.mrf.mxu1  ;;  %220 = vst.msk [vmem:[%s628_s2 + $0x40] sm:$0xff] %vm54_vm2, %v486_v16  ;;  %v271_v63 = vmul.f32 %v486_v16, %v486_v16  ;;  %v244_v4 = vsel %vm54_vm2, %v486_v16, 0.0  ;;  %v275_v20 = vmul.f32 %v488_v17, %v488_v17 }
  0x98   :  { %213 = vst.msk [vmem:[%s628_s2 + $0x8] sm:$0xff] %vm54_vm2, %v173_v18  ;;  %v264_v25 = vmul.f32 %v173_v18, %v173_v18  ;;  %v230_v27 = vsel %vm54_vm2, %v173_v18, 0.0  ;;  %v268_v47 = vmul.f32 %v183_v19, %v183_v19  ;;  %v238_v52 = vsel %vm54_vm2, %v183_v19, 0.0 }
  0x99   :  { %217 = vst.msk [vmem:[%s628_s2 + $0x28] sm:$0xff] %vm54_vm2, %v183_v19  ;;  %v231_v32 = vadd.f32 %v230_v27, %v229_v29  ;;  %v294_v9 = vsel %vm54_vm2, %v271_v63, 0.0 }
  0x9a   :  { %224 = vst.msk [vmem:[%s628_s2 + $0x60] sm:$0xff] %vm54_vm2, %v488_v17  ;;  %v280_v30 = vsel %vm54_vm2, %v264_v25, 0.0  ;;  %v288_v56 = vsel %vm54_vm2, %v268_v47, 0.0 }
  0x9b   :  { %v281_v37 = vadd.f32 %v280_v30, %v279_v33 }
  0x9e   :  { %v516_v21 = vpop.f32.mrf.mxu2  ;;  %v518_v22 = vpop.f32.mrf.mxu3 }
  0x9f   :  { %v176_v23 = vpop.f32.mrf.mxu0  ;;  %v186_v24 = vpop.f32.mrf.mxu1  ;;  %221 = vst.msk [vmem:[%s628_s2 + $0x48] sm:$0xff] %vm54_vm2, %v516_v21  ;;  %v272_v5 = vmul.f32 %v516_v21, %v516_v21  ;;  %v246_v10 = vsel %vm54_vm2, %v516_v21, 0.0  ;;  %v252_v21 = vsel %vm54_vm2, %v488_v17, 0.0  ;;  %v276_v27 = vmul.f32 %v518_v22, %v518_v22 }
  0xa0   :  { %214 = vst.msk [vmem:[%s628_s2 + $0x10] sm:$0xff] %vm54_vm2, %v176_v23  ;;  %v265_v28 = vmul.f32 %v176_v23, %v176_v23  ;;  %v232_v31 = vsel %vm54_vm2, %v176_v23, 0.0  ;;  %v269_v53 = vmul.f32 %v186_v24, %v186_v24  ;;  %v240_v57 = vsel %vm54_vm2, %v186_v24, 0.0 }
  0xa1   :  { %218 = vst.msk [vmem:[%s628_s2 + $0x30] sm:$0xff] %vm54_vm2, %v186_v24  ;;  %v233_v38 = vadd.f32 %v232_v31, %v231_v32  ;;  %v296_v14 = vsel %vm54_vm2, %v272_v5, 0.0  ;;  %v302_v31 = vsel %vm54_vm2, %v275_v20, 0.0  ;;  %v254_v32 = vsel %vm54_vm2, %v518_v22, 0.0 }
  0xa2   :  { %225 = vst.msk [vmem:[%s628_s2 + $0x68] sm:$0xff] %vm54_vm2, %v518_v22  ;;  %v282_v34 = vsel %vm54_vm2, %v265_v28, 0.0  ;;  %v290_v0 = vsel %vm54_vm2, %v269_v53, 0.0 }
  0xa3   :  { %v283_v44 = vadd.f32 %v282_v34, %v281_v37  ;;  %v304_v37 = vsel %vm54_vm2, %v276_v27, 0.0 }
  0xa6   :  { %v196_v35 = vpop.f32.mrf.mxu2  ;;  %v544_v36 = vpop.f32.mrf.mxu3 }
  0xa7   :  { %v178_v39 = vpop.f32.mrf.mxu0  ;;  %v188_v40 = vpop.f32.mrf.mxu1  ;;  %222 = vst.msk [vmem:[%s628_s2 + $0x50] sm:$0xff] %vm54_vm2, %v196_v35  ;;  %v273_v11 = vmul.f32 %v196_v35, %v196_v35  ;;  %v248_v15 = vsel %vm54_vm2, %v196_v35, 0.0  ;;  %v277_v33 = vmul.f32 %v544_v36, %v544_v36  ;;  %v256_v17 = vsel %vm54_vm2, %v544_v36, 0.0 }
  0xa8   :  { %215 = vst.msk [vmem:[%s628_s2 + $0x18] sm:$0xff] %vm54_vm2, %v178_v39  ;;  %v234_v42 = vsel %vm54_vm2, %v178_v39, 0.0  ;;  %v266_v43 = vmul.f32 %v178_v39, %v178_v39  ;;  %v270_v58 = vmul.f32 %v188_v40, %v188_v40  ;;  %v242_v1 = vsel %vm54_vm2, %v188_v40, 0.0 }
  0xa9   :  { %v235_v45 = vadd.f32 %v234_v42, %v233_v38  ;;  %219 = vst.msk [vmem:[%s628_s2 + $0x38] sm:$0xff] %vm54_vm2, %v188_v40  ;;  %v298_v23 = vsel %vm54_vm2, %v273_v11, 0.0  ;;  %v306_v41 = vsel %vm54_vm2, %v277_v33, 0.0  ;;  %v228_v42 = vld [vmem:[%s629_s3] sm:$0xff] }
  0xaa   :  { %v284_v48 = vsel %vm54_vm2, %v266_v43, 0.0  ;;  %226 = vst.msk [vmem:[%s628_s2 + $0x70] sm:$0xff] %vm54_vm2, %v544_v36  ;;  %v292_v6 = vsel %vm54_vm2, %v270_v58, 0.0 }
  0xab   :  { %v237_v49 = vadd.f32 %v236_v46, %v235_v45  ;;  %v285_v50 = vadd.f32 %v284_v48, %v283_v44  ;;  %v262_v45 = vld [vmem:[%s629_s3 + $0x8] sm:$0xff] }
  0xad   :  { %v287_v54 = vadd.f32 %v286_v51, %v285_v50  ;;  %v239_v55 = vadd.f32 %v238_v52, %v237_v49 }
  0xae   :  { %v198_v59 = vpop.f32.mrf.mxu2  ;;  %v208_v60 = vpop.f32.mrf.mxu3 }
  0xaf   :  { %v241_v61 = vadd.f32 %v240_v57, %v239_v55  ;;  %v289_v62 = vadd.f32 %v288_v56, %v287_v54  ;;  %223 = vst.msk [vmem:[%s628_s2 + $0x58] sm:$0xff] %vm54_vm2, %v198_v59  ;;  %v274_v16 = vmul.f32 %v198_v59, %v198_v59  ;;  %v250_v24 = vsel %vm54_vm2, %v198_v59, 0.0 }
  0xb0   :  { %227 = vst.msk [vmem:[%s628_s2 + $0x78] sm:$0xff] %vm54_vm2, %v208_v60  ;;  %v278_v38 = vmul.f32 %v208_v60, %v208_v60  ;;  %v258_v22 = vsel %vm54_vm2, %v208_v60, 0.0 }
  0xb1   :  { %v243_v2 = vadd.f32 %v242_v1, %v241_v61  ;;  %v291_v3 = vadd.f32 %v290_v0, %v289_v62  ;;  %v300_v28 = vsel %vm54_vm2, %v274_v16, 0.0 }
  0xb2   :  { %v308_v46 = vsel %vm54_vm2, %v278_v38, 0.0 }
  0xb3   :  { %v245_v7 = vadd.f32 %v244_v4, %v243_v2  ;;  %v293_v8 = vadd.f32 %v292_v6, %v291_v3 }
  0xb5   :  { %v295_v12 = vadd.f32 %v294_v9, %v293_v8  ;;  %v247_v13 = vadd.f32 %v246_v10, %v245_v7 }
  0xb7   :  { %v249_v18 = vadd.f32 %v248_v15, %v247_v13  ;;  %v297_v19 = vadd.f32 %v296_v14, %v295_v12 }
  0xb9   :  { %v299_v25 = vadd.f32 %v298_v23, %v297_v19  ;;  %v251_v26 = vadd.f32 %v250_v24, %v249_v18 }
  0xbb   :  { %v253_v29 = vadd.f32 %v252_v21, %v251_v26  ;;  %v301_v30 = vadd.f32 %v300_v28, %v299_v25 }
  0xbd   :  { %v303_v34 = vadd.f32 %v302_v31, %v301_v30  ;;  %v255_v35 = vadd.f32 %v254_v32, %v253_v29 }
  0xbf   :  { %v257_v39 = vadd.f32 %v256_v17, %v255_v35  ;;  %v305_v40 = vadd.f32 %v304_v37, %v303_v34 }
  0xc1   :  { %v307_v43 = vadd.f32 %v306_v41, %v305_v40  ;;  %v259_v44 = vadd.f32 %v258_v22, %v257_v39 }
  0xc3   :  { %v260_v36 = vadd.f32 %v259_v44, %v228_v42  ;;  %v309_v47 = vadd.f32 %v308_v46, %v307_v43 }
  0xc5   :  { %261 = vst.msk [vmem:[%s629_s3] sm:$0xff] %vm54_vm2, %v260_v36  ;;  %v310_v48 = vadd.f32 %v309_v47, %v262_v45 }
  0xc7   :  { %311 = vst.msk [vmem:[%s629_s3 + $0x8] sm:$0xff] %vm54_vm2, %v310_v48 }

</bundles_post_ra>
